<compile_context>
chip_gen: v6e
topology: v6e:2x2x1
jax: 0.10.0
libtpu: 0.0.40
codegen_flags: <defaults>
</compile_context>

<pallas_src>
import jax
import jax.numpy as jnp
from jax.experimental import pallas as pl
from jax.experimental.pallas import tpu as pltpu


def _sse_oct2_kernel(xh_ref, xl_ref, wh_ref, wl_ref, b_ref, oh_ref, ol_ref):
    # xh_ref / xl_ref: (C, T_HW) tiles; wh/wl: (1, C) in the input dtype; b: (1, 1) f32.
    xh = xh_ref[...]
    xl = xl_ref[...]

    # 1x1 conv on concat([x_H, x_L], channel)  ==  w_H @ x_H + w_L @ x_L + b.
    # MXU matmuls with f32 accumulation regardless of input dtype.
    s = (jnp.dot(wh_ref[...], xh, preferred_element_type=jnp.float32)
         + jnp.dot(wl_ref[...], xl, preferred_element_type=jnp.float32)
         + b_ref[...])                                  # (1, T_HW), f32
    sq = jax.nn.sigmoid(s)                              # (1, T_HW), f32

    # Cast only the (1, T) gate rows; the big (C, T) multiplies stay in the
    # native tile dtype (bf16 on v6e/v7x -> half the vreg pressure).
    sq_h = sq.astype(xh.dtype)
    sq_l = (1.0 - sq).astype(xl.dtype)

    # output_H = input_H * sq ; output_L = input_L * (1 - sq)
    oh_ref[...] = (xh * sq_h).astype(oh_ref.dtype)
    ol_ref[...] = (xl * sq_l).astype(ol_ref.dtype)


def _vmem_capacity_bytes():
    """Physical VMEM of the attached TPU; conservative (v7x-sized) fallback."""
    try:
        return int(pltpu.get_tpu_info().vmem_capacity_bytes)
    except Exception:
        return 64 * 1024 * 1024


def _pick_spatial_tile(hw, c, dtype_bytes, budget_bytes, batch):
    """Largest lane tile (multiple of 128) whose double-buffered I/O working set
    (2 bufs x {xh, xl, oh, ol} x sublane-padded C x T_HW) fits `budget_bytes`."""
    pack = max(1, 4 // max(dtype_bytes, 1))              # sub-32-bit sublane packing
    c_pad = -(-c // (8 * pack)) * (8 * pack)             # sublane-padded channel count
    per_lane = 2 * 4 * c_pad * dtype_bytes               # bytes per lane of tile width
    max_lanes = max(128, (budget_bytes // per_lane) // 128 * 128)

    t = min(max_lanes, (hw // 128) * 128)
    if t == 0:
        # HW < 128: a full-extent block is the only legal (and tiny) option.
        return hw
    # v7x megacore: guarantee >= 2 grid steps so both TensorCores get work
    # (no effect on single-TC v5e/v6e, and only triggers for tiny batch).
    if batch * (-(-hw // t)) < 2 and t >= 256:
        t = (t // 2 // 128) * 128
    return t


def spatial_se_oct2(input_h, input_l, weight, bias, *,
                    vmem_limit_bytes=None, vmem_budget_bytes=None):
    """weight: (1, 2C) from Conv2d(2C, 1, 1).weight; bias: (1,)."""
    assert input_h.shape == input_l.shape, \
        "input_H and input_L should have the same size"
    assert input_h.dtype == input_l.dtype
    B, one, C, H, W = input_h.shape
    assert one == 1
    assert weight.shape == (1, 2 * C)
    HW = H * W

    if vmem_limit_bytes is None:
        # ~75% of physical VMEM: ~96 MiB on v5e/v6e (128 MiB), ~48 MiB on v7x (64 MiB).
        vmem_limit_bytes = _vmem_capacity_bytes() * 3 // 4
    if vmem_budget_bytes is None:
        # Tile-picker budget; headroom for weight/bias blocks + compiler scratch.
        vmem_budget_bytes = vmem_limit_bytes * 3 // 5

    xh = input_h.reshape(B, C, HW)
    xl = input_l.reshape(B, C, HW)
    w_h = weight[:, :C].astype(input_h.dtype)             # H-half of concat weight
    w_l = weight[:, C:].astype(input_h.dtype)             # L-half
    b = bias.reshape(1, 1).astype(jnp.float32)

    t_hw = _pick_spatial_tile(HW, C, xh.dtype.itemsize, vmem_budget_bytes, B)
    n_sp = -(-HW // t_hw)             # ragged last block handled by Pallas (OOB dropped)
    grid = (B, n_sp)

    x_spec = pl.BlockSpec((pl.Squeezed(), C, t_hw), lambda bi, si: (bi, 0, si))
    w_spec = pl.BlockSpec((1, C), lambda bi, si: (0, 0))
    b_spec = pl.BlockSpec((1, 1), lambda bi, si: (0, 0))

    oh, ol = pl.pallas_call(
        _sse_oct2_kernel,
        out_shape=(jax.ShapeDtypeStruct((B, C, HW), input_h.dtype),
                   jax.ShapeDtypeStruct((B, C, HW), input_l.dtype)),
        grid_spec=pltpu.PrefetchScalarGridSpec(
            num_scalar_prefetch=0,
            grid=grid,
            in_specs=[x_spec, x_spec, w_spec, w_spec, b_spec],
            out_specs=[x_spec, x_spec],
        ),
        compiler_params=pltpu.CompilerParams(
            dimension_semantics=("parallel", "parallel"),
            vmem_limit_bytes=int(vmem_limit_bytes),
        ),
    )(xh, xl, w_h, w_l, b)

    return oh.reshape(B, 1, C, H, W), ol.reshape(B, 1, C, H, W)


def reference(input_h, input_l, weight, bias):
    # Pure-JAX reference mirroring the PyTorch forward.
    x = jnp.concatenate([jnp.squeeze(input_h, axis=1),
                         jnp.squeeze(input_l, axis=1)], axis=1)     # (B, 2C, H, W)
    s = jnp.einsum("oc,bchw->bohw", weight, x) + bias[None, :, None, None]
    sq = jax.nn.sigmoid(s)[:, :, None, :, :]                        # (B, 1, 1, H, W)
    return input_h * sq, input_l * (1.0 - sq)


def _run_case(key, B, C, H, W, dtype=jnp.float32):
    kh, kl, kw, kb = jax.random.split(key, 4)
    input_h = jax.random.normal(kh, (B, 1, C, H, W), dtype)
    input_l = jax.random.normal(kl, (B, 1, C, H, W), dtype)
    bound = 1.0 / ((2 * C) ** 0.5)
    weight = jax.random.uniform(kw, (1, 2 * C), jnp.float32, -bound, bound)
    bias = jax.random.uniform(kb, (1,), jnp.float32, -bound, bound)

    out_h, out_l = spatial_se_oct2(input_h, input_l, weight, bias)
    jax.block_until_ready((out_h, out_l))

    ref_h, ref_l = reference(input_h.astype(jnp.float32),
                             input_l.astype(jnp.float32), weight, bias)
    assert out_h.shape == input_h.shape and out_l.shape == input_l.shape
    tol = 1e-5 if dtype == jnp.float32 else 2e-2
    assert jnp.allclose(out_h.astype(jnp.float32), ref_h, atol=tol, rtol=tol), "output_H mismatch"
    assert jnp.allclose(out_l.astype(jnp.float32), ref_l, atol=tol, rtol=tol), "output_L mismatch"


if __name__ == "__main__":
    key = jax.random.PRNGKey(0)
    k0, k1 = jax.random.split(key)

    # Small canonical case: B=2, C=4, 16x16 spatial (HW multiple of 128).
    _run_case(k0, B=2, C=4, H=16, W=16, dtype=jnp.float32)
    # Ragged spatial case: HW = 18*18 = 324 (not a multiple of 128) exercises the
    # cdiv grid / partial-last-block path.
    _run_case(k1, B=2, C=4, H=18, W=18, dtype=jnp.float32)

    print("KERNEL_OK")
</pallas_src>

<mosaic_0001>
module attributes {stable_mosaic.version = 11 : i64} {
  func.func @_sse_oct2_kernel(%arg0: i32, %arg1: i32, %arg2: memref<1x4x256xf32, #tpu.memory_space<vmem>>, %arg3: memref<1x4x256xf32, #tpu.memory_space<vmem>>, %arg4: memref<1x4xf32, #tpu.memory_space<vmem>>, %arg5: memref<1x4xf32, #tpu.memory_space<vmem>>, %arg6: memref<1x1xf32, #tpu.memory_space<vmem>>, %arg7: memref<1x4x256xf32, #tpu.memory_space<vmem>>, %arg8: memref<1x4x256xf32, #tpu.memory_space<vmem>>) attributes {dimension_semantics = [#tpu.dimension_semantics<parallel>, #tpu.dimension_semantics<parallel>], iteration_bounds = array<i64: 2, 1>, scalar_prefetch = 0 : i64, scratch_operands = 0 : i64, tpu.core_type = #tpu.core_type<tc>, window_params = [{transform_indices = @transform_0, window_bounds = array<i64: 1, 4, 256>}, {transform_indices = @transform_1, window_bounds = array<i64: 1, 4, 256>}, {pipeline_mode = #tpu.pipeline_mode<synchronous>, transform_indices = @transform_2, window_bounds = array<i64: 1, 4>}, {pipeline_mode = #tpu.pipeline_mode<synchronous>, transform_indices = @transform_3, window_bounds = array<i64: 1, 4>}, {pipeline_mode = #tpu.pipeline_mode<synchronous>, transform_indices = @transform_4, window_bounds = array<i64: 1, 1>}, {transform_indices = @transform_5, window_bounds = array<i64: 1, 4, 256>}, {transform_indices = @transform_6, window_bounds = array<i64: 1, 4, 256>}]} {
    %c0 = arith.constant 0 : index
    %c0_0 = arith.constant 0 : index
    %c0_1 = arith.constant 0 : index
    %0 = vector.load %arg2[%c0, %c0_0, %c0_1] : memref<1x4x256xf32, #tpu.memory_space<vmem>>, vector<1x4x256xf32>
    %1 = vector.shape_cast %0 : vector<1x4x256xf32> to vector<4x256xf32>
    %c0_2 = arith.constant 0 : index
    %c0_3 = arith.constant 0 : index
    %c0_4 = arith.constant 0 : index
    %2 = vector.load %arg3[%c0_2, %c0_3, %c0_4] : memref<1x4x256xf32, #tpu.memory_space<vmem>>, vector<1x4x256xf32>
    %3 = vector.shape_cast %2 : vector<1x4x256xf32> to vector<4x256xf32>
    %c0_5 = arith.constant 0 : index
    %c0_6 = arith.constant 0 : index
    %4 = vector.load %arg4[%c0_5, %c0_6] : memref<1x4xf32, #tpu.memory_space<vmem>>, vector<1x4xf32>
    %cst = arith.constant dense<0.000000e+00> : vector<1x256xf32>
    %5 = tpu.matmul %4, %1, %cst {dimension_numbers = #tpu.dot_dimension_numbers<[1], [0], [0], [1], [0, 0, 1, 1], [], []>} : vector<1x4xf32>, vector<4x256xf32>, vector<1x256xf32> -> vector<1x256xf32>
    %c0_7 = arith.constant 0 : index
    %c0_8 = arith.constant 0 : index
    %6 = vector.load %arg5[%c0_7, %c0_8] : memref<1x4xf32, #tpu.memory_space<vmem>>, vector<1x4xf32>
    %cst_9 = arith.constant dense<0.000000e+00> : vector<1x256xf32>
    %7 = tpu.matmul %6, %3, %cst_9 {dimension_numbers = #tpu.dot_dimension_numbers<[1], [0], [0], [1], [0, 0, 1, 1], [], []>} : vector<1x4xf32>, vector<4x256xf32>, vector<1x256xf32> -> vector<1x256xf32>
    %8 = arith.addf %5, %7 : vector<1x256xf32>
    %c0_10 = arith.constant 0 : index
    %c0_11 = arith.constant 0 : index
    %9 = vector.load %arg6[%c0_10, %c0_11] : memref<1x1xf32, #tpu.memory_space<vmem>>, vector<1x1xf32>
    %10 = vector.broadcast %9 : vector<1x1xf32> to vector<1x256xf32>
    %11 = arith.addf %8, %10 : vector<1x256xf32>
    %12 = arith.negf %11 : vector<1x256xf32>
    %13 = math.exp %12 : vector<1x256xf32>
    %cst_12 = arith.constant 1.000000e+00 : f32
    %14 = vector.broadcast %cst_12 : f32 to vector<1x256xf32>
    %15 = arith.addf %14, %13 : vector<1x256xf32>
    %16 = arith.divf %14, %15 : vector<1x256xf32>
    %cst_13 = arith.constant 1.000000e+00 : f32
    %17 = vector.broadcast %cst_13 : f32 to vector<1x256xf32>
    %18 = arith.subf %17, %16 : vector<1x256xf32>
    %19 = vector.broadcast %16 : vector<1x256xf32> to vector<4x256xf32>
    %20 = arith.mulf %1, %19 : vector<4x256xf32>
    %c0_14 = arith.constant 0 : index
    %c0_15 = arith.constant 0 : index
    %c0_16 = arith.constant 0 : index
    %21 = vector.load %arg7[%c0_14, %c0_15, %c0_16] : memref<1x4x256xf32, #tpu.memory_space<vmem>>, vector<1x4x256xf32>
    %22 = vector.shape_cast %21 : vector<1x4x256xf32> to vector<4x256xf32>
    %23 = vector.shape_cast %20 : vector<4x256xf32> to vector<1x4x256xf32>
    tpu.vector_store %arg7[%c0_14, %c0_15, %c0_16], %23 {strides = array<i32>} : memref<1x4x256xf32, #tpu.memory_space<vmem>>, vector<1x4x256xf32>,
    %24 = vector.broadcast %18 : vector<1x256xf32> to vector<4x256xf32>
    %25 = arith.mulf %3, %24 : vector<4x256xf32>
    %c0_17 = arith.constant 0 : index
    %c0_18 = arith.constant 0 : index
    %c0_19 = arith.constant 0 : index
    %26 = vector.load %arg8[%c0_17, %c0_18, %c0_19] : memref<1x4x256xf32, #tpu.memory_space<vmem>>, vector<1x4x256xf32>
    %27 = vector.shape_cast %26 : vector<1x4x256xf32> to vector<4x256xf32>
    %28 = vector.shape_cast %25 : vector<4x256xf32> to vector<1x4x256xf32>
    tpu.vector_store %arg8[%c0_17, %c0_18, %c0_19], %28 {strides = array<i32>} : memref<1x4x256xf32, #tpu.memory_space<vmem>>, vector<1x4x256xf32>,
    return
  }
  func.func @transform_0(%arg0: i32, %arg1: i32) -> (i32, i32, i32) {
    %c0_i32 = arith.constant 0 : i32
    %c0_i32_0 = arith.constant 0 : i32
    return %arg0, %c0_i32, %arg1 : i32, i32, i32
  }
  func.func @transform_1(%arg0: i32, %arg1: i32) -> (i32, i32, i32) {
    %c0_i32 = arith.constant 0 : i32
    %c0_i32_0 = arith.constant 0 : i32
    return %arg0, %c0_i32, %arg1 : i32, i32, i32
  }
  func.func @transform_2(%arg0: i32, %arg1: i32) -> (i32, i32) {
    %c0_i32 = arith.constant 0 : i32
    %c0_i32_0 = arith.constant 0 : i32
    %c0_i32_1 = arith.constant 0 : i32
    return %c0_i32, %c0_i32_0 : i32, i32
  }
  func.func @transform_3(%arg0: i32, %arg1: i32) -> (i32, i32) {
    %c0_i32 = arith.constant 0 : i32
    %c0_i32_0 = arith.constant 0 : i32
    %c0_i32_1 = arith.constant 0 : i32
    return %c0_i32, %c0_i32_0 : i32, i32
  }
  func.func @transform_4(%arg0: i32, %arg1: i32) -> (i32, i32) {
    %c0_i32 = arith.constant 0 : i32
    %c0_i32_0 = arith.constant 0 : i32
    %c0_i32_1 = arith.constant 0 : i32
    return %c0_i32, %c0_i32_0 : i32, i32
  }
  func.func @transform_5(%arg0: i32, %arg1: i32) -> (i32, i32, i32) {
    %c0_i32 = arith.constant 0 : i32
    %c0_i32_0 = arith.constant 0 : i32
    return %arg0, %c0_i32, %arg1 : i32, i32, i32
  }
  func.func @transform_6(%arg0: i32, %arg1: i32) -> (i32, i32, i32) {
    %c0_i32 = arith.constant 0 : i32
    %c0_i32_0 = arith.constant 0 : i32
    return %arg0, %c0_i32, %arg1 : i32, i32, i32
  }
}

</mosaic_0001>

<bundles_post_ra>
// kernel: tpu_custom_call.1
= control target key start
LH: loop header
LB: loop body
LE: loop exit
PB: predicated region body
PF: predicated region fallthrough
CT: control target
= control target key end

     0   :  { %s1303_s0 = inlined_call_operand.hbm [shape: f32[2,4,256], index: 0, kind: input, shape index: {}]   ;;  %s1304_s1 = inlined_call_operand.hbm [shape: f32[2,4,256], index: 1, kind: input, shape index: {}]   ;;  %s1305_s2 = inlined_call_operand.vmem [shape: f32[1,4], index: 2, kind: input, shape index: {}]   ;;  %s1306_s3 = inlined_call_operand.vmem [shape: f32[1,4], index: 3, kind: input, shape index: {}]   ;;  %s1307_s4 = inlined_call_operand.<no memory space> [shape: f32[1,1], index: 4, kind: input, shape index: {}]   ;;  %s1308_s5 = inlined_call_operand.hbm [shape: f32[2,4,256], index: 5, kind: output, shape index: {0}]   ;;  %s1309_s6 = inlined_call_operand.hbm [shape: f32[2,4,256], index: 6, kind: output, shape index: {1}]  }
   0x1   :  { %1310 = sst [smem:[#allocation15_spill]] %s1303_s0  ;;  %v12_v0 = vstv %s1307_s4 }
   0x2   :  { %13 = vst [vmem:[#allocation2] sm:$0x1] %v12_v0 }
   0x3   :  { %14 = vsyncpa [#allocation4], 0 }
   0x4   :  { %16 = vsyncpa [#allocation4 + $0x1], 0 }
   0x5   :  { %17 = vsyncpa [#allocation7], 0 }
   0x6   :  { %19 = vsyncpa [#allocation7 + $0x1], 0 }
   0x7   :  { %20 = vsyncpa [#allocation5], 0 }
   0x8   :  { %22 = vsyncpa [#allocation5 + $0x1], 0 }
   0x9   :  { %23 = vsyncpa [#allocation10], 0 }
   0xa   :  { %25 = vsyncpa [#allocation10 + $0x1], 0  ;;  %s1086_s23 = smov 0   ;;  %s1088_s24 = smov 0  }
   0xb   :  { %s1090_s25 = smov 0   ;;  %s1092_s26 = smov 0  }
   0xc   :  { %s1094_s27 = smov 0   ;;  %s1096_s4 = smov 0  }
   0xd LB: > { %s750_s28 = sadd.s32 4294967295, %s1040_s4   ;;  %s751_s29 = sadd.s32 4294967294, %s1040_s4   ;;  %s1040_s4 = sphi %s1096_s4, %s31_s4   ;;  %s1036_s27 = sphi %s1094_s27, %s1323_s27   ;;  %s1032_s26 = sphi %s1092_s26, %s1322_s26   ;;  %s1028_s25 = sphi %s1090_s25, %s1321_s25   ;;  %s1024_s24 = sphi %s1088_s24, %s1320_s24   ;;  %s1020_s23 = sphi %s1086_s23, %s1319_s23  }
   0xe   : > { %s43_s30 = sadd.s32 1, %s1036_s27  ;;  %s52_s7 = sadd.s32 1, %s1028_s25 }
   0xf   : > { %p45_p0 = scmp.ge.s32.totalorder %s43_s30, 2  ;;  %p59_p1 = scmp.ne.s32.totalorder %s1028_s25, %s1024_s24 }
  0x10   : > { %p60_p2 = scmp.eq.s32.totalorder %s1040_s4, 0  ;;  %p65_p3 = scmp.ne.s32.totalorder %s1024_s24, %s1020_s23 }
  0x11   : > { %s1325_s30 = smov (%p45_p0, %s43_s30), 0  ;;  %p66_p5 = scmp.eq.s32.totalorder %s750_s28, 0 }
  0x12   : > { %p1127_p4 = por %p60_p2, %p59_p1  ;;  %s47_s9 = ssub.s32 %s1036_s27, %s1325_s30 }
  0x13   : > { %p182_p6 = scmp.eq.s32.totalorder %s750_s28, 1  ;;  %p50_p7 = scmp.eq.s32.totalorder %s47_s9, 0 }
  0x14   : > { %p1133_p8 = por %p66_p5, %p65_p3  ;;  %p188_p10 = scmp.eq.s32.totalorder %s751_s29, 1 }
  0x15   : > { %p1137_p9 = por %p182_p6, %p59_p1  ;;  %p807_p13 = scmp.lt.s32.totalorder %s1040_s4, 2 }
  0x16   : > { %s1142_s12 = scalar_select %p50_p7, %s1028_s25, %s52_s7  }
  0x17   : > { %p1144_p11 = por %p188_p10, %p65_p3  ;;  %s1151_s14 = sand.u32 1, %s1028_s25  }
  0x18   : > { %s754_s15 = sshll.u32 %s1151_s14, 3  ;;  %s781_s16 = sshll.u32 %s1036_s27, 7 }
  0x19   : > { %s1315_s0 = sld [smem:[#allocation15_spill]]  ;;  %s249_s20 = scalar_lea.vmem [#allocation3], %s754_s15 }
  0x1a   : > { %s259_s21 = sshll.u32 %s249_s20, 4  ;;  %p1160_p0 = pnand %p807_p13, %p1127_p4  ;;  %s260_s21 = int_to_ptr.vmem [resolvable:$true] %s259_s21 }
  0x1b   : > { %p760_p1 = scmp.ge.s32.totalorder %s1040_s4, 1  ;;  %p285_p2 = scmp.lt.s32.totalorder %s1040_s4, 3 }
  0x1c   : > { %s246_s28 = scalar_lea.sflag [#allocation4], %s1151_s14  ;;  %p872_p3 = pneg %p1160_p0 }
  0x1d   : > { %s883_s29 = scalar_lea.vmem %s260_s21, 128  ;;  %s1042_s7 = smov [#allocation3]  }
  0x1e   : > { %p884_p5 = scmp.ne.s32.totalorder %s260_s21, %s883_s29  ;;  %s888_s9 = sshll.u32 %s1042_s7, 4  ;;  %s889_s9 = int_to_ptr.vmem [resolvable:$false] %s888_s9 }
  0x1f   : > { %s257_s19 = scalar_lea.hbm %s1315_s0, %s781_s16  ;;  %s890_s8 = scalar_lea.vmem %s889_s9, 256 }
  0x20   : > { %p886_p6 = pnand %p884_p5, %p872_p3  ;;  %p891_p4 = scmp.lt.s32.totalorder %s260_s21, %s889_s9 }
  0x21   : > { %p892_p10 = scmp.lt.s32.totalorder %s890_s8, %s883_s29 }
  0x22   : > { %p887_p7 = pneg %p886_p6 }
  0x23   : > { %p893_p13 = por %p892_p10, %p891_p4 }
  0x25   : > { %p894_p12 = pnand %p893_p13, %p887_p7 }
  0x27   : > { %897 = shalt.err (!%p894_p12)
}
  0x28   : > { %796 = dma.hbm_to_vmem [thread:$0]  (!%p1160_p0), %s257_s19, 128, %s260_s21, %s246_s28  }
  0x29   : > { %p1178_p5 = pnand %p760_p1, %p285_p2  ;;  %s278_s29 = scalar_lea.hbm %s1304_s1, %s781_s16 }
  0x2a   : > { %s270_s7 = scalar_lea.vmem [#allocation6], %s754_s15  ;;  %s267_s8 = scalar_lea.sflag [#allocation7], %s1151_s14 }
  0x2b   : > { %s280_s9 = sshll.u32 %s270_s7, 4  ;;  %s1043_s19 = smov [#allocation6]   ;;  %s281_s9 = int_to_ptr.vmem [resolvable:$true] %s280_s9 }
  0x2c   : > { %s911_s0 = scalar_lea.vmem %s281_s9, 128  ;;  %s916_s21 = sshll.u32 %s1043_s19, 4  ;;  %s917_s21 = int_to_ptr.vmem [resolvable:$false] %s916_s21 }
  0x2d   : > { %p912_p12 = scmp.ne.s32.totalorder %s281_s9, %s911_s0  ;;  %s918_s28 = scalar_lea.vmem %s917_s21, 256 }
  0x2e   : > { %p919_p1 = scmp.lt.s32.totalorder %s281_s9, %s917_s21  ;;  %p920_p2 = scmp.lt.s32.totalorder %s918_s28, %s911_s0 }
  0x2f   : > { %p914_p6 = pnand %p912_p12, %p872_p3 }
  0x30   : > { %p921_p4 = por %p920_p2, %p919_p1 }
  0x31   : > { %p915_p7 = pneg %p914_p6 }
  0x33   : > { %p922_p10 = pnand %p921_p4, %p915_p7 }
  0x35   : > { %925 = shalt.err (!%p922_p10)
}
  0x36   : > { %799 = dma.hbm_to_vmem [thread:$0]  (!%p1160_p0), %s278_s29, 128, %s281_s9, %s267_s8  }
  0x37   : > { %289 = sbr.rel (%p1178_p5) target bundleno = 341 (0x155), region = 40  ;;  %s1194_s14 = sand.u32 (!%p1178_p5), 1, %s1024_s24  }
  0x38   : > { %s1197_s15 = sshll.u32 (!%p1178_p5), %s1194_s14, 3  ;;  %s292_s16 = scalar_lea.sflag (!%p1178_p5), [#allocation4], %s1194_s14 }
  0x39   : > { %s295_s0 = scalar_lea.vmem (!%p1178_p5), [#allocation3], %s1197_s15 }
  0x3c   : > { %1003 = dma.done.wait (%p1133_p8), %s292_s16, 128  }
  0x3d   : > { %1005 = vsyncadd (%p1133_p8), %s292_s16, 4294967168  ;;  %s301_s22 = scalar_lea.sflag [#allocation7], %s1194_s14  ;;  %s304_s17 = scalar_lea.vmem [#allocation6], %s1197_s15 }
  0x3e   : > { %1007 = dma.done.wait (%p1133_p8), %s301_s22, 128  }
  0x3f   : > { %1009 = vsyncadd (%p1133_p8), %s301_s22, 4294967168  ;;  %v1044_v1 = vmov 0.0   ;;  %v1045_v2 = vmov 0   ;;  %v348_v3 = vld [vmem:[%s304_s17] sm:$0xff]  ;;  %vm357_vm0 = vcmask 1043456   ;;  %v347_v4 = vld [vmem:[%s295_s0] sm:$0xff]  ;;  %v519_v10 = vlaneseq }
  0x40   : > { %426 = vmatprep.mubr.f32.mxu0 %v1044_v1  ;;  %506 = vmatprep.mubr.f32.mxu1 %v1044_v1  ;;  %v352_v5 = vcombine.high %v348_v3, %v348_v3  ;;  %v434_v6 = vcombine.high %v347_v4, %v347_v4  ;;  %v513_v7 = vld [vmem:[#allocation2] sm:$0x1]  ;;  %vm353_vm1 = vcmask 31744   ;;  %s783_s10 = sshll.u32 %s1032_s26, 7  ;;  %s335_s9 = scalar_lea.vmem [#allocation8], %s1197_s15 }
  0x41   : > { %859 = vset.pattern.permute.xlu0 %v1045_v2  ;;  %v350_v8 = vld [vmem:[%s1306_s3] sm:$0x1]  ;;  %v520_v11 = vshrl.u32 %v519_v10, 7  ;;  %s589_s8 = sshll.u32 %s335_s9, 4  ;;  %s342_s19 = scalar_lea.vmem [#allocation9], %s1197_s15  ;;  %s1227_s8 = int_to_ptr.vmem [resolvable:$true] %s589_s8 }
  0x42   : > { %v349_v9 = vld [vmem:[%s1305_s2] sm:$0x1]  ;;  %516 = vperm.xlu0 %859, %v513_v7   ;;  %765 = vmatprep.subr.msk.mxu0 %vm357_vm0, %v352_v5  ;;  %s605_s21 = sshll.u32 %s342_s19, 4  ;;  %s1225_s0 = scalar_lea.hbm %s1308_s5, %s783_s10  ;;  %s1234_s21 = int_to_ptr.vmem [resolvable:$true] %s605_s21 }
  0x43   : > { %768 = vmatprep.subr.msk.mxu1 %vm357_vm0, %v434_v6  ;;  %766 = vmatpush1.msk.msra.mxu0 %vm357_vm0, %v348_v3  ;;  %v521_v12 = vsub.s32 0, %v520_v11  ;;  %s1232_s17 = scalar_lea.hbm %s1309_s6, %s783_s10  ;;  %s568_s18 = scalar_lea.sflag [#allocation5], %s1194_s14 }
  0x44   : > { %769 = vmatpush1.msk.msra.mxu1 %vm357_vm0, %v347_v4  ;;  %767 = vmatmul.mubr.msk.f32.vlgmr.msra.gmra.mxu0 %vm353_vm1, %v350_v8  ;;  %s926_s20 = scalar_lea.vmem %s1227_s8, 128  ;;  %s1046_s29 = smov [#allocation8]  }
  0x45   : > { %770 = vmatmul.mubr.msk.f32.vlgmr.msra.gmra.mxu1 %vm353_vm1, %v349_v9  ;;  %p927_p8 = scmp.ne.s32.totalorder %s1227_s8, %s926_s20  ;;  %s930_s7 = sshll.u32 %s1046_s29, 4  ;;  %s931_s7 = int_to_ptr.vmem [resolvable:$false] %s930_s7 }
  0x46   : > { %s932_s28 = scalar_lea.vmem %s931_s7, 256  ;;  %p933_p13 = scmp.lt.s32.totalorder %s1227_s8, %s931_s7 }
  0x47   : > { %p928_p0 = pnand %p927_p8, %p1137_p9  ;;  %p934_p5 = scmp.lt.s32.totalorder %s932_s28, %s926_s20 }
  0x49   : > { %p929_p3 = pneg %p928_p0  ;;  %p935_p12 = por %p934_p5, %p933_p13 }
  0x4b   : > { %p936_p6 = pnand %p935_p12, %p929_p3 }
  0xbd   : > { %v517_v13 = vpop.permute.xlu0 %516 }
  0xbe   : > { %v522_v14 = vrot.slane %v517_v13, %v521_v12 }
 0x104   : > { %v428_v15 = vpop.f32.mrf.mxu0 }
 0x105   : > { %v508_v16 = vpop.f32.mrf.mxu1 }
 0x106   : > { %v509_v17 = vadd.f32 %v508_v16, %v428_v15  ;;  %v430_v18 = vpop.f32.mrf.mxu0 }
 0x107   : > { %v510_v19 = vpop.f32.mrf.mxu1 }
 0x108   : > { %v523_v20 = vadd.f32 %v522_v14, %v509_v17  ;;  %v511_v21 = vadd.f32 %v510_v19, %v430_v18 }
 0x10a   : > { %v771_v22 = vmul.f32 -1.442695, %v523_v20  ;;  %v524_v23 = vadd.f32 %v522_v14, %v511_v21 }
 0x10c   : > { %862 = vpow2.f32 %v771_v22  ;;  %v772_v24 = vmul.f32 -1.442695, %v524_v23 }
 0x10e   : > { %864 = vpow2.f32 %v772_v24 }
 0x119   : > { %v863_v25 = vpop.eup %862 }
 0x11a   : > { %v531_v26 = vadd.f32 1.0, %v863_v25 }
 0x11b   : > { %v865_v27 = vpop.eup %864 }
 0x11c   : > { %866 = vrcp.f32 %v531_v26  ;;  %v532_v28 = vadd.f32 1.0, %v865_v27 }
 0x11e   : > { %868 = vrcp.f32 %v532_v28 }
 0x129   : > { %v867_v29 = vpop.eup %866 }
 0x12a   : > { %v537_v30 = vsub.f32 1.0, %v867_v29  ;;  %v542_v32 = vrot.slane %v867_v29, %v521_v12 }
 0x12b   : > { %v869_v31 = vpop.eup %868 }
 0x12c   : > { %v546_v33 = vrot.slane %v869_v31, %v521_v12  ;;  %v538_v34 = vsub.f32 1.0, %v869_v31  ;;  %v556_v36 = vrot.slane %v537_v30, %v521_v12 }
 0x12e   : > { %v549_v35 = vcombine.low %v542_v32, %v546_v33  ;;  %v560_v37 = vrot.slane %v538_v34, %v521_v12 }
 0x130   : > { %v551_v38 = vmul.f32 %v549_v35, %v347_v4  ;;  %v563_v39 = vcombine.low %v556_v36, %v560_v37 }
 0x132   : > { %552 = vst [vmem:[%s335_s9] sm:$0xff] %v551_v38  ;;  %v565_v40 = vmul.f32 %v563_v39, %v348_v3 }
 0x133   : > { %939 = shalt.err (!%p936_p6)
}
 0x134   : > { %s940_s10 = scalar_lea.hbm %s1225_s0, 128  ;;  %s944_s26 = scalar_lea.hbm %s1308_s5, 256 }
 0x135   : > { %p941_p7 = scmp.ne.s32.totalorder %s1225_s0, %s940_s10  ;;  %p945_p4 = scmp.lt.s32.totalorder %s1225_s0, %s1308_s5 }
 0x136   : > { %p946_p10 = scmp.lt.s32.totalorder %s944_s26, %s940_s10 }
 0x137   : > { %p942_p1 = pnand %p941_p7, %p1137_p9 }
 0x138   : > { %p947_p8 = por %p946_p10, %p945_p4 }
 0x139   : > { %p943_p2 = pneg %p942_p1 }
 0x13b   : > { %p948_p0 = pnand %p947_p8, %p943_p2 }
 0x13d   : > { %951 = shalt.err (!%p948_p0)
}
 0x13e   : > { %789 = dma.vmem_to_hbm [thread:$0]  (%p1137_p9), %s1227_s8, 128, %s1225_s0, %s568_s18   ;;  %566 = vst [vmem:[%s342_s19] sm:$0xff] %v565_v40 }
 0x13f   : > { %s573_s20 = scalar_lea.sflag [#allocation10], %s1194_s14  ;;  %s952_s7 = scalar_lea.vmem %s1234_s21, 128 }
 0x140   : > { %p953_p3 = scmp.ne.s32.totalorder %s1234_s21, %s952_s7  ;;  %s1047_s28 = smov [#allocation9]  }
 0x141   : > { %s956_s10 = sshll.u32 %s1047_s28, 4  ;;  %s957_s10 = int_to_ptr.vmem [resolvable:$false] %s956_s10 }
 0x142   : > { %p954_p13 = pnand %p953_p3, %p1137_p9  ;;  %s958_s9 = scalar_lea.vmem %s957_s10, 256 }
 0x143   : > { %p959_p12 = scmp.lt.s32.totalorder %s1234_s21, %s957_s10  ;;  %p960_p6 = scmp.lt.s32.totalorder %s958_s9, %s952_s7 }
 0x144   : > { %p955_p5 = pneg %p954_p13 }
 0x145   : > { %p961_p7 = por %p960_p6, %p959_p12 }
 0x147   : > { %p962_p1 = pnand %p961_p7, %p955_p5 }
 0x149   : > { %965 = shalt.err (!%p962_p1)
}
 0x14a   : > { %s966_s15 = scalar_lea.hbm %s1232_s17, 128  ;;  %s970_s19 = scalar_lea.hbm %s1309_s6, 256 }
 0x14b   : > { %p967_p2 = scmp.ne.s32.totalorder %s1232_s17, %s966_s15  ;;  %p971_p8 = scmp.lt.s32.totalorder %s1232_s17, %s1309_s6 }
 0x14c   : > { %p972_p0 = scmp.lt.s32.totalorder %s970_s19, %s966_s15 }
 0x14d   : > { %p968_p4 = pnand %p967_p2, %p1137_p9 }
 0x14e   : > { %p973_p3 = por %p972_p0, %p971_p8 }
 0x14f   : > { %p969_p10 = pneg %p968_p4 }
 0x151   : > { %p974_p13 = pnand %p973_p3, %p969_p10 }
 0x153   : > { %977 = shalt.err (!%p974_p13)
}
 0x154   : > { %790 = dma.vmem_to_hbm [thread:$0]  (%p1137_p9), %s1234_s21, 128, %s1232_s17, %s573_s20  }
 0x155 PF: > { %s617_s16 = sand.u32 1, %s1020_s23   ;;  %p1318_p5 = scmp.ge.s32.totalorder %s1040_s4, 2 }
 0x156   : > { %s618_s26 = scalar_lea.sflag [#allocation5], %s617_s16 }
 0x157   : > { %p801_p12 = pnand %p1318_p5, %p1144_p11 }
 0x159   : > { %p802_p6 = pneg %p801_p12 }
 0x15b   : > { %1011 = dma.done.wait (%p802_p6), %s618_s26, 128  }
 0x15c   : > { %1013 = vsyncadd (%p802_p6), %s618_s26, 4294967168  ;;  %s627_s22 = scalar_lea.sflag [#allocation10], %s617_s16 }
 0x15d   : > { %1015 = dma.done.wait (%p802_p6), %s627_s22, 128  }
 0x15e   : > { %1017 = vsyncadd (%p802_p6), %s627_s22, 4294967168  ;;  %s31_s4 = sadd.s32 1, %s1040_s4   ;;  %s1319_s23 = smov %s1024_s24 }
 0x15f   : > { %p28_p7 = scmp.ge.s32.totalorder %s31_s4, 4   ;;  %s1320_s24 = smov %s1028_s25 }
 0x160   : > { %s1321_s25 = smov %s1142_s12  ;;  %s1322_s26 = smov %s1036_s27 }
 0x161   : > { %s1323_s27 = smov %s1325_s30  ;;  %30 = sbr.rel (!%p28_p7) target bundleno = 13 (0xd), region = 115 }
 0x166   :  { %632 = vsyncpa [#allocation4], 1 }
 0x167   :  { %634 = vsyncpa [#allocation4 + $0x1], 1 }
 0x168   :  { %635 = vsyncpa [#allocation7], 1 }
 0x169   :  { %637 = vsyncpa [#allocation7 + $0x1], 1 }
 0x16a   :  { %638 = vsyncpa [#allocation5], 1 }
 0x16b   :  { %640 = vsyncpa [#allocation5 + $0x1], 1 }
 0x16c   :  { %641 = vsyncpa [#allocation10], 1 }
 0x16d   :  { %643 = vsyncpa [#allocation10 + $0x1], 1 }

</bundles_post_ra>
